<compile_context>
chip_gen: v7x
topology: tpu7x:2x2x1
jax: 0.10.0
libtpu: 0.0.40
codegen_flags: <defaults>
</compile_context>

<pallas_src>
import jax
import jax.numpy as jnp
from jax.experimental import pallas as pl
from jax.experimental.pallas import tpu as pltpu


def _mf_kernel(u_idx_ref, i_idx_ref, uf_t_ref, if_t_ref, o_ref):
    # u_idx_ref / i_idx_ref : (1, TB) int32   index tiles for this grid step
    # uf_t_ref              : (F_pad, NU_pad) f32, VMEM-resident user table^T
    # if_t_ref              : (F_pad, NI_pad) f32, VMEM-resident item table^T
    # o_ref                 : (1, TB) f32     predictions (lane-dense)
    u_idx = u_idx_ref[...]                     # (1, TB)
    i_idx = i_idx_ref[...]                     # (1, TB)
    nu = uf_t_ref.shape[1]
    ni = if_t_ref.shape[1]
    tb = u_idx.shape[1]

    # One-hot gather via MXU: col j of the result is the embedding row idx[j].
    u_onehot = (jax.lax.broadcasted_iota(jnp.int32, (nu, tb), 0)
                == u_idx).astype(jnp.float32)                     # (NU, TB)
    i_onehot = (jax.lax.broadcasted_iota(jnp.int32, (ni, tb), 0)
                == i_idx).astype(jnp.float32)                     # (NI, TB)

    ue = jnp.dot(uf_t_ref[...], u_onehot,
                 preferred_element_type=jnp.float32)              # (F_pad, TB)
    ie = jnp.dot(if_t_ref[...], i_onehot,
                 preferred_element_type=jnp.float32)              # (F_pad, TB)

    # Per-row dot (biases already folded in): VPU multiply + XLU sublane reduce.
    o_ref[...] = jnp.sum(ue * ie, axis=0, keepdims=True)          # (1, TB)


def mfpt_forward(users, items, users_biases, items_biases,
                 user_factors, item_factors, *, tb=128):
    """Pallas implementation of mfpt.forward (eval mode)."""
    B = users.shape[0]
    F = user_factors.shape[1]
    n_users = user_factors.shape[0]
    n_items = item_factors.shape[0]

    # Fold biases into the factor tables:
    #   [uf | ub | 1] . [if | 1 | ib] = sum(uf*if) + ub + ib
    ones_u = jnp.ones((n_users, 1), jnp.float32)
    ones_i = jnp.ones((n_items, 1), jnp.float32)
    uf_aug = jnp.concatenate(
        [user_factors.astype(jnp.float32), users_biases.astype(jnp.float32), ones_u],
        axis=1)                                                   # (n_users, F+2)
    if_aug = jnp.concatenate(
        [item_factors.astype(jnp.float32), ones_i, items_biases.astype(jnp.float32)],
        axis=1)                                                   # (n_items, F+2)

    # Transpose so the gathered tile is (F_aug, TB) (lane-dense over the batch),
    # then pad to clean (8, 128) layout (zero rows/cols never contribute).
    uf_t = uf_aug.T                                               # (F+2, n_users)
    if_t = if_aug.T                                               # (F+2, n_items)
    f_aug = F + 2
    f_pad = (-f_aug) % 8
    u_pad = (-n_users) % 128
    i_pad = (-n_items) % 128
    uf_t = jnp.pad(uf_t, ((0, f_pad), (0, u_pad)))
    if_t = jnp.pad(if_t, ((0, f_pad), (0, i_pad)))
    fp = f_aug + f_pad
    nu = n_users + u_pad
    ni = n_items + i_pad

    # Pad the batch to a multiple of TB and reshape to (tiles, TB).
    b_pad = (-B) % tb
    u_idx = jnp.pad(users.astype(jnp.int32), (0, b_pad)).reshape(-1, tb)
    i_idx = jnp.pad(items.astype(jnp.int32), (0, b_pad)).reshape(-1, tb)
    n_tiles = u_idx.shape[0]

    out = pl.pallas_call(
        _mf_kernel,
        out_shape=jax.ShapeDtypeStruct((n_tiles, tb), jnp.float32),
        grid=(n_tiles,),
        in_specs=[
            pl.BlockSpec((1, tb), lambda i: (i, 0)),      # user index tile
            pl.BlockSpec((1, tb), lambda i: (i, 0)),      # item index tile
            pl.BlockSpec((fp, nu), lambda i: (0, 0)),     # user table (VMEM-resident)
            pl.BlockSpec((fp, ni), lambda i: (0, 0)),     # item table (VMEM-resident)
        ],
        out_specs=pl.BlockSpec((1, tb), lambda i: (i, 0)),
        compiler_params=pltpu.CompilerParams(
            dimension_semantics=("parallel",),
        ),
    )(u_idx, i_idx, uf_t, if_t)

    return out.reshape(-1)[:B]   # == preds.reshape(-1).squeeze()


def mfpt_reference(users, items, users_biases, items_biases,
                   user_factors, item_factors):
    ue = user_factors[users]                                     # (B, F)
    ie = item_factors[items]                                     # (B, F)
    preds = users_biases[users] + items_biases[items]            # (B, 1)
    preds = preds + jnp.sum(ue * ie, axis=1, keepdims=True)      # (B, 1)
    return preds.reshape(-1)


if __name__ == "__main__":
    # Model hyperparameters (small, consistent with the module's __init__).
    n_users, n_items, n_factors = 64, 64, 32
    batch = 8

    key = jax.random.PRNGKey(0)
    k_ub, k_ib, k_uf, k_if, k_u, k_i = jax.random.split(key, 6)

    # nn.Embedding default init ~ N(0, 1), deterministic here.
    users_biases = jax.random.normal(k_ub, (n_users, 1), dtype=jnp.float32)
    items_biases = jax.random.normal(k_ib, (n_items, 1), dtype=jnp.float32)
    user_factors = jax.random.normal(k_uf, (n_users, n_factors), dtype=jnp.float32)
    item_factors = jax.random.normal(k_if, (n_items, n_factors), dtype=jnp.float32)

    users = jax.random.randint(k_u, (batch,), 0, n_users, dtype=jnp.int32)
    items = jax.random.randint(k_i, (batch,), 0, n_items, dtype=jnp.int32)

    preds = mfpt_forward(users, items, users_biases, items_biases,
                         user_factors, item_factors)
    preds = jax.block_until_ready(preds)

    ref = mfpt_reference(users, items, users_biases, items_biases,
                         user_factors, item_factors)
    assert preds.shape == (batch,)
    assert jnp.allclose(preds, ref, atol=1e-5, rtol=1e-5), (preds, ref)

    print("KERNEL_OK")
</pallas_src>

<mosaic_0001>
module attributes {stable_mosaic.version = 11 : i64} {
  func.func @_mf_kernel(%arg0: i32, %arg1: memref<1x128xi32, #tpu.memory_space<vmem>>, %arg2: memref<1x128xi32, #tpu.memory_space<vmem>>, %arg3: memref<40x128xf32, #tpu.memory_space<vmem>>, %arg4: memref<40x128xf32, #tpu.memory_space<vmem>>, %arg5: memref<1x128xf32, #tpu.memory_space<vmem>>) attributes {dimension_semantics = [#tpu.dimension_semantics<parallel>], iteration_bounds = array<i64: 1>, scalar_prefetch = 0 : i64, scratch_operands = 0 : i64, tpu.core_type = #tpu.core_type<tc>, window_params = [{transform_indices = @transform_0, window_bounds = array<i64: 1, 128>}, {transform_indices = @transform_1, window_bounds = array<i64: 1, 128>}, {pipeline_mode = #tpu.pipeline_mode<synchronous>, transform_indices = @transform_2, window_bounds = array<i64: 40, 128>}, {pipeline_mode = #tpu.pipeline_mode<synchronous>, transform_indices = @transform_3, window_bounds = array<i64: 40, 128>}, {transform_indices = @transform_4, window_bounds = array<i64: 1, 128>}]} {
    %c0 = arith.constant 0 : index
    %c0_0 = arith.constant 0 : index
    %0 = vector.load %arg1[%c0, %c0_0] : memref<1x128xi32, #tpu.memory_space<vmem>>, vector<1x128xi32>
    %c0_1 = arith.constant 0 : index
    %c0_2 = arith.constant 0 : index
    %1 = vector.load %arg2[%c0_1, %c0_2] : memref<1x128xi32, #tpu.memory_space<vmem>>, vector<1x128xi32>
    %2 = tpu.iota {dimensions = array<i32: 0>} : vector<128x128xi32>
    %3 = vector.broadcast %0 : vector<1x128xi32> to vector<128x128xi32>
    %4 = arith.cmpi eq, %2, %3 : vector<128x128xi32>
    %5 = arith.extui %4 : vector<128x128xi1> to vector<128x128xi32>
    %6 = arith.sitofp %5 : vector<128x128xi32> to vector<128x128xf32>
    %7 = tpu.iota {dimensions = array<i32: 0>} : vector<128x128xi32>
    %8 = vector.broadcast %1 : vector<1x128xi32> to vector<128x128xi32>
    %9 = arith.cmpi eq, %7, %8 : vector<128x128xi32>
    %10 = arith.extui %9 : vector<128x128xi1> to vector<128x128xi32>
    %11 = arith.sitofp %10 : vector<128x128xi32> to vector<128x128xf32>
    %c0_3 = arith.constant 0 : index
    %c0_4 = arith.constant 0 : index
    %12 = vector.load %arg3[%c0_3, %c0_4] : memref<40x128xf32, #tpu.memory_space<vmem>>, vector<40x128xf32>
    %cst = arith.constant dense<0.000000e+00> : vector<40x128xf32>
    %13 = tpu.matmul %12, %6, %cst {dimension_numbers = #tpu.dot_dimension_numbers<[1], [0], [0], [1], [0, 0, 1, 1], [], []>} : vector<40x128xf32>, vector<128x128xf32>, vector<40x128xf32> -> vector<40x128xf32>
    %c0_5 = arith.constant 0 : index
    %c0_6 = arith.constant 0 : index
    %14 = vector.load %arg4[%c0_5, %c0_6] : memref<40x128xf32, #tpu.memory_space<vmem>>, vector<40x128xf32>
    %cst_7 = arith.constant dense<0.000000e+00> : vector<40x128xf32>
    %15 = tpu.matmul %14, %11, %cst_7 {dimension_numbers = #tpu.dot_dimension_numbers<[1], [0], [0], [1], [0, 0, 1, 1], [], []>} : vector<40x128xf32>, vector<128x128xf32>, vector<40x128xf32> -> vector<40x128xf32>
    %16 = arith.mulf %13, %15 : vector<40x128xf32>
    %cst_8 = arith.constant dense<0.000000e+00> : vector<128xf32>
    %17 = vector.multi_reduction <add>, %16, %cst_8 [0] : vector<40x128xf32> to vector<128xf32>
    %18 = vector.shape_cast %17 : vector<128xf32> to vector<1x128xf32>
    %c0_9 = arith.constant 0 : index
    %c0_10 = arith.constant 0 : index
    %19 = vector.load %arg5[%c0_9, %c0_10] : memref<1x128xf32, #tpu.memory_space<vmem>>, vector<1x128xf32>
    tpu.vector_store %arg5[%c0_9, %c0_10], %18 {strides = array<i32>} : memref<1x128xf32, #tpu.memory_space<vmem>>, vector<1x128xf32>,
    return
  }
  func.func @transform_0(%arg0: i32) -> (i32, i32) {
    %c0_i32 = arith.constant 0 : i32
    %c0_i32_0 = arith.constant 0 : i32
    return %arg0, %c0_i32 : i32, i32
  }
  func.func @transform_1(%arg0: i32) -> (i32, i32) {
    %c0_i32 = arith.constant 0 : i32
    %c0_i32_0 = arith.constant 0 : i32
    return %arg0, %c0_i32 : i32, i32
  }
  func.func @transform_2(%arg0: i32) -> (i32, i32) {
    %c0_i32 = arith.constant 0 : i32
    %c0_i32_0 = arith.constant 0 : i32
    %c0_i32_1 = arith.constant 0 : i32
    return %c0_i32, %c0_i32_0 : i32, i32
  }
  func.func @transform_3(%arg0: i32) -> (i32, i32) {
    %c0_i32 = arith.constant 0 : i32
    %c0_i32_0 = arith.constant 0 : i32
    %c0_i32_1 = arith.constant 0 : i32
    return %c0_i32, %c0_i32_0 : i32, i32
  }
  func.func @transform_4(%arg0: i32) -> (i32, i32) {
    %c0_i32 = arith.constant 0 : i32
    %c0_i32_0 = arith.constant 0 : i32
    return %arg0, %c0_i32 : i32, i32
  }
}

</mosaic_0001>

<bundles_post_ra>
// kernel: tpu_custom_call.1
= control target key start
LH: loop header
LB: loop body
LE: loop exit
PB: predicated region body
PF: predicated region fallthrough
CT: control target
= control target key end

     0   :  { %9 = vsyncpa [#allocation3], 0  ;;  %s955_s0 = inlined_call_operand.hbm [shape: s32[1,128], index: 0, kind: input, shape index: {}]   ;;  %s956_s1 = inlined_call_operand.vmem [shape: s32[1,128], index: 1, kind: input, shape index: {}]   ;;  %s957_s2 = inlined_call_operand.hbm [shape: f32[40,128], index: 2, kind: input, shape index: {}]   ;;  %s958_s3 = inlined_call_operand.hbm [shape: f32[40,128], index: 3, kind: input, shape index: {}]   ;;  %s959_s4 = inlined_call_operand.hbm [shape: f32[1,128], index: 4, kind: output, shape index: {}]  }
   0x1   :  { %10 = vsyncpa [#allocation6], 0 }
   0x2   :  { %11 = vsyncpa [#allocation4], 0  ;;  %s756_s15 = smov [#allocation5]   ;;  %s662_s19 = scalar_lea.hbm %s957_s2, 640 }
   0x3   :  { %s29_s16 = sshll.u32 %s756_s15, 4  ;;  %p663_p0 = scmp.ne.s32.totalorder %s957_s2, %s662_s19  ;;  %s30_s16 = int_to_ptr.vmem [resolvable:$true] %s29_s16 }
   0x4   :  { %p666_p1 = scmp.lt.u32.totalorder %s662_s19, %s957_s2 }
   0x6   :  { %p668_p2 = pnand %p666_p1, %p663_p0 }
   0x8   :  { %671 = shalt.err (!%p668_p2)
}
   0x9   :  { %s672_s24 = scalar_lea.vmem %s30_s16, 640  ;;  %p677_p4 = scmp.lt.s32.totalorder %s30_s16, %s30_s16 }
   0xa   :  { %p673_p3 = scmp.ne.s32.totalorder %s30_s16, %s672_s24  ;;  %p678_p5 = scmp.lt.s32.totalorder %s672_s24, %s672_s24 }
   0xc   :  { %p679_p6 = por %p678_p5, %p677_p4 }
   0xe   :  { %p680_p7 = pnand %p679_p6, %p673_p3 }
  0x10   :  { %683 = shalt.err (!%p680_p7)
}
  0x11   :  { %s757_s25 = smov 128   ;;  %s758_s26 = smov 8  }
  0x12   :  { %35 = dma.hbm_to_vmem [thread:$0]  %s957_s2, 640, %s30_s16, [#allocation6], %s757_s25, %s757_s25, %s758_s26  }
  0x13   :  { %s759_s29 = smov [#allocation2]   ;;  %s760_s5 = smov [#allocation7]  }
  0x14   :  { %s18_s30 = sshll.u32 %s759_s29, 4  ;;  %s41_s6 = sshll.u32 %s760_s5, 4  ;;  %s19_s30 = int_to_ptr.vmem [resolvable:$true] %s18_s30  ;;  %s42_s6 = int_to_ptr.vmem [resolvable:$true] %s41_s6 }
  0x15   :  { %s684_s9 = scalar_lea.hbm %s955_s0, 16 }
  0x16   :  { %p685_p8 = scmp.ne.s32.totalorder %s955_s0, %s684_s9  ;;  %p688_p9 = scmp.lt.u32.totalorder %s684_s9, %s955_s0 }
  0x18   :  { %p690_p10 = pnand %p688_p9, %p685_p8 }
  0x1a   :  { %693 = shalt.err (!%p690_p10)
}
  0x1b   :  { %s694_s2 = scalar_lea.vmem %s19_s30, 16  ;;  %s698_s14 = scalar_lea.vmem %s19_s30, 32 }
  0x1c   :  { %p695_p11 = scmp.ne.s32.totalorder %s19_s30, %s694_s2  ;;  %p699_p12 = scmp.lt.s32.totalorder %s19_s30, %s19_s30 }
  0x1d   :  { %p700_p13 = scmp.lt.s32.totalorder %s698_s14, %s694_s2 }
  0x1f   :  { %p701_p0 = por %p700_p13, %p699_p12 }
  0x21   :  { %p702_p1 = pnand %p701_p0, %p695_p11 }
  0x23   :  { %705 = shalt.err (!%p702_p1)
}
  0x24   :  { %21 = dma.hbm_to_vmem [thread:$0]  %s955_s0, 16, %s19_s30, [#allocation3]  }
  0x25   :  { %s706_s19 = scalar_lea.hbm %s958_s3, 640 }
  0x26   :  { %p707_p2 = scmp.ne.s32.totalorder %s958_s3, %s706_s19  ;;  %p710_p3 = scmp.lt.u32.totalorder %s706_s19, %s958_s3 }
  0x28   :  { %p712_p4 = pnand %p710_p3, %p707_p2 }
  0x2a   :  { %715 = shalt.err (!%p712_p4)
}
  0x2b   :  { %s716_s24 = scalar_lea.vmem %s42_s6, 640  ;;  %p721_p6 = scmp.lt.s32.totalorder %s42_s6, %s42_s6 }
  0x2c   :  { %p717_p5 = scmp.ne.s32.totalorder %s42_s6, %s716_s24  ;;  %p722_p7 = scmp.lt.s32.totalorder %s716_s24, %s716_s24 }
  0x2e   :  { %p723_p8 = por %p722_p7, %p721_p6 }
  0x30   :  { %p724_p9 = pnand %p723_p8, %p717_p5 }
  0x32   :  { %727 = shalt.err (!%p724_p9)
}
  0x33   :  { %47 = dma.hbm_to_vmem [thread:$0]  %s958_s3, 640, %s42_s6, [#allocation6], %s757_s25, %s757_s25, %s758_s26  }
  0x34   :  { %750 = dma.done.wait [#allocation3], 16  }
  0x35   :  { %751 = vsyncadd [#allocation3], 4294967280 }
  0x36   :  { %752 = dma.done.wait [#allocation6], 1280  }
  0x37   :  { %753 = vsyncadd [#allocation6], 4294966016  ;;  %v59_v0 = vlaneseq  ;;  %v761_v1 = vmov 0.0|0.0   ;;  %vm762_vm0 = vmmov 0   ;;  %v763_v3 = vmov 0.0   ;;  %v180_v22 = vld [vmem:[#allocation5] sm:$0xff] }
  0x38   :  { %604 = vmatprep.subr.bf16.mxu0 %v761_v1  ;;  %628 = vmatprep.subr.bf16.mxu1 %v761_v1  ;;  %v844_v7 = vld [vmem:[#allocation2] ss:$0 sm:$0xff]  ;;  %v764_v11 = vmov 1.0|1.0   ;;  %v275_v23 = vld [vmem:[#allocation7] sm:$0xff]  ;;  %v276_v25 = vld [vmem:[#allocation7 + $0x8] sm:$0xff] }
  0x39   :  { %v835_v2 = vshrl.u32 %v59_v0, 7  ;;  %542 = vmatprep.mubr.msk.f32.mxu0 %vm762_vm0, %v763_v3  ;;  %589 = vmatprep.mubr.msk.f32.mxu1 %vm762_vm0, %v763_v3  ;;  %v849_v8 = vld [vmem:[%s956_s1] ss:$0 sm:$0xff]  ;;  %v181_v24 = vld [vmem:[#allocation5 + $0x8] sm:$0xff]  ;;  %v182_v26 = vld [vmem:[#allocation5 + $0x10] sm:$0xff]  ;;  %s765_s1 = smov [#allocation8]  }
  0x3a   :  { %v277_v27 = vld [vmem:[#allocation7 + $0x10] sm:$0xff]  ;;  %v278_v29 = vld [vmem:[#allocation7 + $0x18] sm:$0xff]  ;;  %v279_v31 = vld [vmem:[#allocation7 + $0x20] sm:$0xff]  ;;  %s392_s26 = sshll.u32 %s765_s1, 4  ;;  %s393_s26 = int_to_ptr.vmem [resolvable:$true] %s392_s26 }
  0x3b   :  { %v61_v4 = vadd.s32 8, %v835_v2  ;;  %v62_v5 = vadd.s32 16, %v835_v2  ;;  %v63_v6 = vadd.s32 24, %v835_v2  ;;  %v64_v9 = vadd.s32 32, %v835_v2  ;;  %v183_v28 = vld [vmem:[#allocation5 + $0x18] sm:$0xff]  ;;  %v184_v30 = vld [vmem:[#allocation5 + $0x20] sm:$0xff]  ;;  %p733_p11 = scmp.lt.s32.totalorder %s393_s26, %s393_s26 }
  0x3c   :  { %v65_v10 = vadd.s32 40, %v835_v2  ;;  %vm80_vm1 = vcmp.eq.s32.totalorder %v835_v2, %v844_v7  ;;  %vm132_vm3 = vcmp.eq.s32.totalorder %v835_v2, %v849_v8  ;;  %v66_v12 = vadd.s32 48, %v835_v2  ;;  %s728_s28 = scalar_lea.vmem %s393_s26, 16  ;;  %s732_s29 = scalar_lea.vmem %s393_s26, 32 }
  0x3d   :  { %vm81_vm2 = vcmp.eq.s32.totalorder %v61_v4, %v844_v7  ;;  %vm133_vm4 = vcmp.eq.s32.totalorder %v61_v4, %v849_v8  ;;  %vm82_vm6 = vcmp.eq.s32.totalorder %v62_v5, %v844_v7  ;;  %vm83_vm7 = vcmp.eq.s32.totalorder %v63_v6, %v844_v7  ;;  %p729_p10 = scmp.ne.s32.totalorder %s393_s26, %s728_s28  ;;  %p734_p12 = scmp.lt.s32.totalorder %s732_s29, %s728_s28 }
  0x3e   :  { %vm605_vm5 = vmpackc.low %vm81_vm2, %vm80_vm1  ;;  %vm134_vm8 = vcmp.eq.s32.totalorder %v62_v5, %v849_v8  ;;  %vm135_vm9 = vcmp.eq.s32.totalorder %v63_v6, %v849_v8  ;;  %vm84_vm13 = vcmp.eq.s32.totalorder %v64_v9, %v844_v7  ;;  %vm85_vm14 = vcmp.eq.s32.totalorder %v65_v10, %v844_v7 }
  0x3f   :  { %606 = vmatpush3.bf16.msk.msra.mxu0 %vm605_vm5, %v764_v11  ;;  %vm629_vm10 = vmpackc.low %vm133_vm4, %vm132_vm3  ;;  %v67_v13 = vadd.s32 56, %v835_v2  ;;  %vm136_vm15 = vcmp.eq.s32.totalorder %v64_v9, %v849_v8  ;;  %vm137_vm1 = vcmp.eq.s32.totalorder %v65_v10, %v849_v8  ;;  %vm86_vm4 = vcmp.eq.s32.totalorder %v66_v12, %v844_v7  ;;  %p735_p13 = por %p734_p12, %p733_p11 }
  0x40   :  { %630 = vmatpush3.bf16.msk.msra.mxu1 %vm629_vm10, %v764_v11  ;;  %607 = vmatprep.subr.bf16.mxu0 %v761_v1  ;;  %vm608_vm11 = vmpackc.low %vm83_vm7, %vm82_vm6  ;;  %v68_v14 = vadd.s32 64, %v835_v2  ;;  %v69_v15 = vadd.s32 72, %v835_v2  ;;  %vm138_vm6 = vcmp.eq.s32.totalorder %v66_v12, %v849_v8  ;;  %v70_v16 = vadd.s32 80, %v835_v2 }
  0x41   :  { %631 = vmatprep.subr.bf16.mxu1 %v761_v1  ;;  %vm632_vm12 = vmpackc.low %vm135_vm9, %vm134_vm8  ;;  %vm87_vm5 = vcmp.eq.s32.totalorder %v67_v13, %v844_v7  ;;  %vm139_vm7 = vcmp.eq.s32.totalorder %v67_v13, %v849_v8  ;;  %v71_v17 = vadd.s32 88, %v835_v2  ;;  %v72_v18 = vadd.s32 96, %v835_v2  ;;  %p736_p0 = pnand %p735_p13, %p729_p10 }
  0x42   :  { %vm611_vm2 = vmpackc.low %vm85_vm14, %vm84_vm13  ;;  %vm88_vm10 = vcmp.eq.s32.totalorder %v68_v14, %v844_v7  ;;  %vm141_vm13 = vcmp.eq.s32.totalorder %v69_v15, %v849_v8  ;;  %v73_v19 = vadd.s32 104, %v835_v2  ;;  %v74_v20 = vadd.s32 112, %v835_v2 }
  0x43   :  { %609 = vmatpush3.bf16.msk.msra.mxu0 %vm608_vm11, %v764_v11  ;;  %vm635_vm3 = vmpackc.low %vm137_vm1, %vm136_vm15  ;;  %vm89_vm11 = vcmp.eq.s32.totalorder %v69_v15, %v844_v7  ;;  %vm90_vm1 = vcmp.eq.s32.totalorder %v70_v16, %v844_v7  ;;  %v75_v21 = vadd.s32 120, %v835_v2 }
  0x44   :  { %633 = vmatpush3.bf16.msk.msra.mxu1 %vm632_vm12, %v764_v11  ;;  %610 = vmatprep.subr.bf16.mxu0 %v761_v1  ;;  %vm614_vm8 = vmpackc.low %vm87_vm5, %vm86_vm4  ;;  %vm140_vm12 = vcmp.eq.s32.totalorder %v68_v14, %v849_v8  ;;  %vm143_vm4 = vcmp.eq.s32.totalorder %v71_v17, %v849_v8 }
  0x45   :  { %634 = vmatprep.subr.bf16.mxu1 %v761_v1  ;;  %vm638_vm9 = vmpackc.low %vm139_vm7, %vm138_vm6  ;;  %vm92_vm7 = vcmp.eq.s32.totalorder %v72_v18, %v844_v7 }
  0x46   :  { %vm617_vm14 = vmpackc.low %vm89_vm11, %vm88_vm10  ;;  %vm145_vm10 = vcmp.eq.s32.totalorder %v73_v19, %v849_v8 }
  0x47   :  { %612 = vmatpush3.bf16.msk.msra.mxu0 %vm611_vm2, %v764_v11  ;;  %vm641_vm15 = vmpackc.low %vm141_vm13, %vm140_vm12  ;;  %vm91_vm2 = vcmp.eq.s32.totalorder %v71_v17, %v844_v7  ;;  %vm94_vm13 = vcmp.eq.s32.totalorder %v74_v20, %v844_v7 }
  0x48   :  { %636 = vmatpush3.bf16.msk.msra.mxu1 %vm635_vm3, %v764_v11  ;;  %613 = vmatprep.subr.bf16.mxu0 %v761_v1  ;;  %vm142_vm3 = vcmp.eq.s32.totalorder %v70_v16, %v849_v8  ;;  %vm620_vm5 = vmpackc.low %vm91_vm2, %vm90_vm1  ;;  %vm147_vm1 = vcmp.eq.s32.totalorder %v75_v21, %v849_v8 }
  0x49   :  { %637 = vmatprep.subr.bf16.mxu1 %v761_v1  ;;  %vm644_vm6 = vmpackc.low %vm143_vm4, %vm142_vm3 }
  0x4b   :  { %615 = vmatpush3.bf16.msk.msra.mxu0 %vm614_vm8, %v764_v11  ;;  %vm93_vm8 = vcmp.eq.s32.totalorder %v73_v19, %v844_v7 }
  0x4c   :  { %639 = vmatpush3.bf16.msk.msra.mxu1 %vm638_vm9, %v764_v11  ;;  %616 = vmatprep.subr.bf16.mxu0 %v761_v1  ;;  %vm144_vm9 = vcmp.eq.s32.totalorder %v72_v18, %v849_v8  ;;  %vm623_vm11 = vmpackc.low %vm93_vm8, %vm92_vm7 }
  0x4d   :  { %640 = vmatprep.subr.bf16.mxu1 %v761_v1  ;;  %vm647_vm12 = vmpackc.low %vm145_vm10, %vm144_vm9 }
  0x4f   :  { %618 = vmatpush3.bf16.msk.msra.mxu0 %vm617_vm14, %v764_v11  ;;  %vm95_vm14 = vcmp.eq.s32.totalorder %v75_v21, %v844_v7 }
  0x50   :  { %642 = vmatpush3.bf16.msk.msra.mxu1 %vm641_vm15, %v764_v11  ;;  %619 = vmatprep.subr.bf16.mxu0 %v761_v1  ;;  %vm146_vm15 = vcmp.eq.s32.totalorder %v74_v20, %v849_v8  ;;  %vm626_vm2 = vmpackc.low %vm95_vm14, %vm94_vm13 }
  0x51   :  { %643 = vmatprep.subr.bf16.mxu1 %v761_v1  ;;  %vm650_vm3 = vmpackc.low %vm147_vm1, %vm146_vm15 }
  0x53   :  { %621 = vmatpush3.bf16.msk.msra.mxu0 %vm620_vm5, %v764_v11 }
  0x54   :  { %645 = vmatpush3.bf16.msk.msra.mxu1 %vm644_vm6, %v764_v11  ;;  %622 = vmatprep.subr.bf16.mxu0 %v761_v1 }
  0x55   :  { %646 = vmatprep.subr.bf16.mxu1 %v761_v1 }
  0x57   :  { %624 = vmatpush3.bf16.msk.msra.mxu0 %vm623_vm11, %v764_v11 }
  0x58   :  { %648 = vmatpush3.bf16.msk.msra.mxu1 %vm647_vm12, %v764_v11  ;;  %625 = vmatprep.subr.bf16.mxu0 %v761_v1 }
  0x59   :  { %649 = vmatprep.subr.bf16.mxu1 %v761_v1 }
  0x5b   :  { %627 = vmatpush3.bf16.msk.msra.mxu0 %vm626_vm2, %v764_v11 }
  0x5c   :  { %651 = vmatpush3.bf16.msk.msra.mxu1 %vm650_vm3, %v764_v11 }
  0x5e   :  { %543 = vmatmul.mubr.f32.vlgmr.msra.gmra.mrb[0].mxu0 %v180_v22 }
  0x5f   :  { %590 = vmatmul.mubr.f32.vlgmr.msra.gmra.mrb[0].mxu1 %v275_v23  ;;  %545 = vmatprep.mubr.msk.f32.mxu0 %vm762_vm0, %v763_v3 }
  0x60   :  { %592 = vmatprep.mubr.msk.f32.mxu1 %vm762_vm0, %v763_v3 }
  0x62   :  { %546 = vmatmul.mubr.f32.gmra.mrb[2].mxu0 %v181_v24 }
  0x63   :  { %593 = vmatmul.mubr.f32.gmra.mrb[2].mxu1 %v276_v25  ;;  %548 = vmatprep.mubr.msk.f32.mxu0 %vm762_vm0, %v763_v3 }
  0x64   :  { %595 = vmatprep.mubr.msk.f32.mxu1 %vm762_vm0, %v763_v3 }
  0x66   :  { %549 = vmatmul.mubr.f32.gmra.mrb[4].mxu0 %v182_v26 }
  0x67   :  { %596 = vmatmul.mubr.f32.gmra.mrb[4].mxu1 %v277_v27  ;;  %551 = vmatprep.mubr.msk.f32.mxu0 %vm762_vm0, %v763_v3 }
  0x68   :  { %598 = vmatprep.mubr.msk.f32.mxu1 %vm762_vm0, %v763_v3 }
  0x6a   :  { %552 = vmatmul.mubr.f32.gmra.mrb[6].mxu0 %v183_v28 }
  0x6b   :  { %599 = vmatmul.mubr.f32.gmra.mrb[6].mxu1 %v278_v29  ;;  %554 = vmatprep.mubr.msk.f32.mxu0 %vm762_vm0, %v763_v3 }
  0x6c   :  { %601 = vmatprep.mubr.msk.f32.mxu1 %vm762_vm0, %v763_v3 }
  0x6e   :  { %555 = vmatmul.mubr.f32.gmra.mrb[8].mxu0 %v184_v30 }
  0x6f   :  { %602 = vmatmul.mubr.f32.gmra.mrb[8].mxu1 %v279_v31 }
 0x131   :  { %v251_v32 = vpop.f32.mrb[0].mxu0 }
 0x132   :  { %v346_v33 = vpop.f32.mrb[0].mxu1  ;;  %v544_v34 = vpop.f32.mrb[1].mxu0 }
 0x133   :  { %v370_v35 = vmul.f32 %v346_v33, %v251_v32  ;;  %v591_v36 = vpop.f32.mrb[1].mxu1 }
 0x135   :  { %v256_v37 = vpop.f32.mrb[2].mxu0 }
 0x136   :  { %v351_v38 = vpop.f32.mrb[2].mxu1  ;;  %v547_v39 = vpop.f32.mrb[3].mxu0 }
 0x137   :  { %v371_v40 = vmul.f32 %v351_v38, %v256_v37  ;;  %v594_v41 = vpop.f32.mrb[3].mxu1 }
 0x139   :  { %v375_v42 = vadd.f32 %v371_v40, %v370_v35  ;;  %v261_v43 = vpop.f32.mrb[4].mxu0 }
 0x13a   :  { %v356_v44 = vpop.f32.mrb[4].mxu1  ;;  %v550_v45 = vpop.f32.mrb[5].mxu0 }
 0x13b   :  { %v372_v46 = vmul.f32 %v356_v44, %v261_v43  ;;  %v597_v47 = vpop.f32.mrb[5].mxu1 }
 0x13d   :  { %v376_v48 = vadd.f32 %v375_v42, %v372_v46  ;;  %v266_v49 = vpop.f32.mrb[6].mxu0 }
 0x13e   :  { %v361_v50 = vpop.f32.mrb[6].mxu1  ;;  %v553_v51 = vpop.f32.mrb[7].mxu0 }
 0x13f   :  { %v373_v52 = vmul.f32 %v361_v50, %v266_v49  ;;  %v600_v53 = vpop.f32.mrb[7].mxu1 }
 0x141   :  { %v377_v54 = vadd.f32 %v376_v48, %v373_v52  ;;  %v271_v55 = vpop.f32.mrb[8].mxu0 }
 0x142   :  { %v366_v56 = vpop.f32.mrb[8].mxu1  ;;  %v556_v57 = vpop.f32.mrb[9].mxu0 }
 0x143   :  { %v374_v58 = vmul.f32 %v366_v56, %v271_v55  ;;  %v603_v59 = vpop.f32.mrb[9].mxu1 }
 0x145   :  { %v378_v60 = vadd.f32 %v377_v54, %v374_v58 }
 0x147   :  { %v379_v61 = vrot.slane %v378_v60, 4 }
 0x149   :  { %v380_v62 = vadd.f32 %v379_v61, %v378_v60 }
 0x14b   :  { %v381_v63 = vrot.slane %v380_v62, 2 }
 0x14d   :  { %v382_v0 = vadd.f32 %v381_v63, %v380_v62 }
 0x14f   :  { %v383_v1 = vrot.slane %v382_v0, 1 }
 0x151   :  { %v384_v2 = vadd.f32 %v383_v1, %v382_v0 }
 0x153   :  { %385 = vst [vmem:[#allocation8] sm:$0x1] %v384_v2 }
 0x154   :  { %739 = shalt.err (!%p736_p0)
}
 0x155   :  { %s740_s6 = scalar_lea.hbm %s959_s4, 16 }
 0x156   :  { %p741_p1 = scmp.ne.s32.totalorder %s959_s4, %s740_s6  ;;  %p744_p2 = scmp.lt.u32.totalorder %s740_s6, %s959_s4 }
 0x158   :  { %p746_p3 = pnand %p744_p2, %p741_p1 }
 0x15a   :  { %749 = shalt.err (!%p746_p3)
}
 0x15b   :  { %395 = dma.vmem_to_hbm [thread:$0]  %s393_s26, 16, %s959_s4, [#allocation4]  }
 0x15c   :  { %754 = dma.done.wait [#allocation4], 16  }
 0x15d   :  { %755 = vsyncadd [#allocation4], 4294967280 }
 0x15e   :  { %399 = vsyncpa [#allocation3], 1 }
 0x15f   :  { %400 = vsyncpa [#allocation6], 1 }
 0x160   :  { %401 = vsyncpa [#allocation4], 1 }

</bundles_post_ra>
